<compile_context>
chip_gen: v7x
topology: tpu7x:2x2x1
jax: 0.10.0
libtpu: 0.0.40
codegen_flags: <defaults>
</compile_context>

<pallas_src>
import functools

import jax
import jax.numpy as jnp
from jax import lax
from jax.experimental import pallas as pl
from jax.experimental.pallas import tpu as pltpu


def _ls_ce_kernel(x_ref, t_ref, out_ref, *, n_valid, ignore_index):
    i = pl.program_id(0)
    tn, c = x_ref.shape

    x = x_ref[...].astype(jnp.float32)          # (tn, c)
    t = t_ref[...]                              # (tn, 1) int32

    # Rows beyond the original N (garbage in the partial last block) contribute
    # nothing.  Keep select (jnp.where) masking so NaN/Inf garbage cannot leak.
    row_ids = i * tn + lax.broadcasted_iota(jnp.int32, (tn, 1), 0)
    row_valid = row_ids < n_valid               # (tn, 1) bool

    # numerically stable log-sum-exp per row
    m = jnp.max(x, axis=-1, keepdims=True)
    lse = m + jnp.log(jnp.sum(jnp.exp(x - m), axis=-1, keepdims=True))  # (tn,1)
    sum_x = jnp.sum(x, axis=-1, keepdims=True)                          # (tn,1)

    # per-row smoothing term: -sum_j log_softmax(x)_j = c*lse - sum_x
    smooth = jnp.where(row_valid, c * lse - sum_x, 0.0)                 # (tn,1)

    # gather x[i, t[i]] via a lane-index compare (VPU friendly, no real gather)
    col_ids = lax.broadcasted_iota(jnp.int32, (tn, c), 1)
    gathered = jnp.sum(jnp.where(col_ids == t, x, 0.0), axis=-1, keepdims=True)

    tgt_valid = jnp.logical_and(row_valid, t != ignore_index)
    nll = jnp.where(tgt_valid, lse - gathered, 0.0)     # -log_softmax at target
    cnt = tgt_valid.astype(jnp.float32)

    # Per-block partial sums -> sublanes 0/1/2 of this block's (1, 8, 128) slab
    # (lane-broadcast).  Final cross-block reduction happens in the wrapper.
    s_smooth = jnp.sum(smooth)
    s_nll = jnp.sum(nll)
    s_cnt = jnp.sum(cnt)

    sub = lax.broadcasted_iota(jnp.int32, (1, 8, 128), 1)
    out_ref[...] = jnp.where(
        sub == 0, s_smooth,
        jnp.where(sub == 1, s_nll,
                  jnp.where(sub == 2, s_cnt, jnp.float32(0.0))))


def _pick_tile_rows(n, c, itemsize, *, budget_bytes=32 << 20, max_rows=4096):
    """Largest multiple-of-8 row tile whose double-buffered logits blocks fit
    `budget_bytes` (kept <= 32 MiB so the pipeline stays alive on v7x)."""
    per_row = 2 * max(c, 128) * itemsize        # double-buffered, lane-padded
    rows = budget_bytes // max(per_row, 1)
    rows = max(8, min(int(rows), max_rows))
    rows = rows // 8 * 8
    n_ceil8 = ((n + 7) // 8) * 8
    return max(8, min(rows, n_ceil8))


def label_smoothing_cross_entropy(output, target, *, eps=0.1, reduction="mean",
                                  ignore_index=-100, tile_rows=None):
    """Forward pass of LabelSmoothingCrossEntropy.

    output: (N, C) float logits (f32 or bf16).
    target: (N,) int class ids; `ignore_index` marks ignored rows.
    """
    n, c = output.shape
    itemsize = jnp.dtype(output.dtype).itemsize
    target = target.astype(jnp.int32).reshape(n, 1)

    if tile_rows is None:
        tile_rows = _pick_tile_rows(n, c, itemsize)
    grid = pl.cdiv(n, tile_rows)

    # Explicit scoped-VMEM limit: double-buffered logits + targets + out slabs,
    # plus margin.  Default caps (16 MiB v5e / 32 MiB v6e+) are far too small
    # for large row tiles.
    c_pad = ((c + 127) // 128) * 128
    vmem_limit = 2 * (tile_rows * c_pad * itemsize        # logits blocks
                      + tile_rows * 128 * 4               # target blocks
                      + 8 * 128 * 4)                      # output slabs
    vmem_limit = int(min(max(vmem_limit + (8 << 20), 32 << 20), 128 << 20))

    kernel = functools.partial(_ls_ce_kernel, n_valid=n,
                               ignore_index=ignore_index)

    partials = pl.pallas_call(
        kernel,
        out_shape=jax.ShapeDtypeStruct((grid, 8, 128), jnp.float32),
        grid=(grid,),
        in_specs=[
            pl.BlockSpec((tile_rows, c), lambda i: (i, 0)),
            pl.BlockSpec((tile_rows, 1), lambda i: (i, 0)),
        ],
        out_specs=pl.BlockSpec((1, 8, 128), lambda i: (i, 0, 0)),
        compiler_params=pltpu.CompilerParams(
            dimension_semantics=("parallel",),
            vmem_limit_bytes=vmem_limit),
    )(output, target)

    sum_smooth = jnp.sum(partials[:, 0, 0])
    sum_nll = jnp.sum(partials[:, 1, 0])
    valid_cnt = jnp.sum(partials[:, 2, 0])

    if reduction == "sum":
        smooth_term = sum_smooth
        nll_term = sum_nll
    elif reduction == "mean":
        smooth_term = sum_smooth / n          # mean over ALL rows (torch semantics)
        nll_term = sum_nll / valid_cnt        # mean over non-ignored rows
    else:
        # TODO(synk): reduction='none' needs a per-row output; not wired up here.
        raise NotImplementedError("only 'mean' and 'sum' reductions supported")

    return smooth_term * (eps / c) + (1.0 - eps) * nll_term


def _reference(output, target, *, eps=0.1, ignore_index=-100):
    """Pure-JAX reference mirroring the PyTorch forward (reduction='mean')."""
    c = output.shape[-1]
    logp = jax.nn.log_softmax(output.astype(jnp.float32), axis=-1)
    smooth = (-logp.sum(axis=-1)).mean()
    valid = target != ignore_index
    safe_t = jnp.clip(target, 0, c - 1)
    gathered = jnp.take_along_axis(logp, safe_t[:, None], axis=-1)[:, 0]
    nll = jnp.sum(jnp.where(valid, -gathered, 0.0)) / jnp.sum(valid)
    return smooth * eps / c + (1.0 - eps) * nll


if __name__ == "__main__":
    key = jax.random.PRNGKey(0)
    k1, k2 = jax.random.split(key)

    batch, seq, n_classes = 2, 8, 32
    n = batch * seq                                  # flattened (N, C) logits

    logits = jax.random.normal(k1, (n, n_classes), dtype=jnp.float32) * 2.0
    targets = jax.random.randint(k2, (n,), 0, n_classes, dtype=jnp.int32)
    targets = targets.at[3].set(-100).at[10].set(-100)   # some ignored rows

    loss = label_smoothing_cross_entropy(logits, targets,
                                         eps=0.1, reduction="mean",
                                         ignore_index=-100)
    loss = jax.block_until_ready(loss)

    ref = _reference(logits, targets, eps=0.1, ignore_index=-100)
    assert jnp.allclose(loss, ref, rtol=1e-5, atol=1e-5), (loss, ref)

    # also exercise a ragged row count (partial last block, no host-side pad)
    loss2 = jax.block_until_ready(
        label_smoothing_cross_entropy(logits[:13], targets[:13],
                                      eps=0.1, reduction="mean",
                                      ignore_index=-100, tile_rows=8))
    ref2 = _reference(logits[:13], targets[:13], eps=0.1, ignore_index=-100)
    assert jnp.allclose(loss2, ref2, rtol=1e-5, atol=1e-5), (loss2, ref2)

    print("KERNEL_OK")
</pallas_src>

<mosaic_0001>
module attributes {stable_mosaic.version = 11 : i64} {
  func.func @_ls_ce_kernel(%arg0: i32, %arg1: memref<16x32xf32, #tpu.memory_space<vmem>>, %arg2: memref<16x1xi32, #tpu.memory_space<vmem>>, %arg3: memref<1x8x128xf32, #tpu.memory_space<vmem>>) attributes {dimension_semantics = [#tpu.dimension_semantics<parallel>], iteration_bounds = array<i64: 1>, scalar_prefetch = 0 : i64, scratch_operands = 0 : i64, tpu.core_type = #tpu.core_type<tc>, window_params = [{transform_indices = @transform_0, window_bounds = array<i64: 16, 32>}, {transform_indices = @transform_1, window_bounds = array<i64: 16, 1>}, {transform_indices = @transform_2, window_bounds = array<i64: 1, 8, 128>}]} {
    %c0 = arith.constant 0 : index
    %c0_0 = arith.constant 0 : index
    %0 = vector.load %arg1[%c0, %c0_0] : memref<16x32xf32, #tpu.memory_space<vmem>>, vector<16x32xf32>
    %c0_1 = arith.constant 0 : index
    %c0_2 = arith.constant 0 : index
    %1 = vector.load %arg2[%c0_1, %c0_2] : memref<16x1xi32, #tpu.memory_space<vmem>>, vector<16x1xi32>
    %c16_i32 = arith.constant 16 : i32
    %2 = arith.muli %arg0, %c16_i32 : i32
    %3 = tpu.iota {dimensions = array<i32: 0>} : vector<16x1xi32>
    %4 = vector.broadcast %2 : i32 to vector<16x1xi32>
    %5 = arith.addi %4, %3 : vector<16x1xi32>
    %c16_i32_3 = arith.constant 16 : i32
    %6 = vector.broadcast %c16_i32_3 : i32 to vector<16x1xi32>
    %7 = arith.cmpi slt, %5, %6 : vector<16x1xi32>
    %cst = arith.constant dense<0xFF800000> : vector<16xf32>
    %8 = vector.multi_reduction <maximumf>, %0, %cst [1] : vector<16x32xf32> to vector<16xf32>
    %9 = vector.shape_cast %8 : vector<16xf32> to vector<16x1xf32>
    %10 = vector.broadcast %9 : vector<16x1xf32> to vector<16x32xf32>
    %11 = arith.subf %0, %10 : vector<16x32xf32>
    %12 = math.exp %11 : vector<16x32xf32>
    %cst_4 = arith.constant dense<0.000000e+00> : vector<16xf32>
    %13 = vector.multi_reduction <add>, %12, %cst_4 [1] : vector<16x32xf32> to vector<16xf32>
    %14 = vector.shape_cast %13 : vector<16xf32> to vector<16x1xf32>
    %15 = math.log %14 : vector<16x1xf32>
    %16 = arith.addf %9, %15 : vector<16x1xf32>
    %cst_5 = arith.constant dense<0.000000e+00> : vector<16xf32>
    %17 = vector.multi_reduction <add>, %0, %cst_5 [1] : vector<16x32xf32> to vector<16xf32>
    %18 = vector.shape_cast %17 : vector<16xf32> to vector<16x1xf32>
    %cst_6 = arith.constant 3.200000e+01 : f32
    %19 = vector.broadcast %cst_6 : f32 to vector<16x1xf32>
    %20 = arith.mulf %19, %16 : vector<16x1xf32>
    %21 = arith.subf %20, %18 : vector<16x1xf32>
    %cst_7 = arith.constant 0.000000e+00 : f32
    %22 = vector.broadcast %cst_7 : f32 to vector<16x1xf32>
    %23 = arith.select %7, %21, %22 : vector<16x1xi1>, vector<16x1xf32>
    %24 = tpu.iota {dimensions = array<i32: 1>} : vector<16x32xi32>
    %25 = vector.broadcast %1 : vector<16x1xi32> to vector<16x32xi32>
    %26 = arith.cmpi eq, %24, %25 : vector<16x32xi32>
    %cst_8 = arith.constant 0.000000e+00 : f32
    %27 = vector.broadcast %cst_8 : f32 to vector<16x32xf32>
    %28 = arith.select %26, %0, %27 : vector<16x32xi1>, vector<16x32xf32>
    %cst_9 = arith.constant dense<0.000000e+00> : vector<16xf32>
    %29 = vector.multi_reduction <add>, %28, %cst_9 [1] : vector<16x32xf32> to vector<16xf32>
    %30 = vector.shape_cast %29 : vector<16xf32> to vector<16x1xf32>
    %c-100_i32 = arith.constant -100 : i32
    %31 = vector.broadcast %c-100_i32 : i32 to vector<16x1xi32>
    %32 = arith.cmpi ne, %1, %31 : vector<16x1xi32>
    %33 = arith.andi %7, %32 : vector<16x1xi1>
    %34 = arith.subf %16, %30 : vector<16x1xf32>
    %cst_10 = arith.constant 0.000000e+00 : f32
    %35 = vector.broadcast %cst_10 : f32 to vector<16x1xf32>
    %36 = arith.select %33, %34, %35 : vector<16x1xi1>, vector<16x1xf32>
    %37 = arith.extui %33 : vector<16x1xi1> to vector<16x1xi32>
    %38 = arith.sitofp %37 : vector<16x1xi32> to vector<16x1xf32>
    %39 = vector.shape_cast %23 : vector<16x1xf32> to vector<1x16x1xf32>
    %cst_11 = arith.constant dense<0.000000e+00> : vector<1xf32>
    %40 = vector.multi_reduction <add>, %39, %cst_11 [1, 2] : vector<1x16x1xf32> to vector<1xf32>
    %41 = vector.shape_cast %40 : vector<1xf32> to vector<1x1x1xf32>
    %42 = vector.extract %41[0, 0, 0] : f32 from vector<1x1x1xf32>
    %43 = vector.shape_cast %36 : vector<16x1xf32> to vector<1x16x1xf32>
    %cst_12 = arith.constant dense<0.000000e+00> : vector<1xf32>
    %44 = vector.multi_reduction <add>, %43, %cst_12 [1, 2] : vector<1x16x1xf32> to vector<1xf32>
    %45 = vector.shape_cast %44 : vector<1xf32> to vector<1x1x1xf32>
    %46 = vector.extract %45[0, 0, 0] : f32 from vector<1x1x1xf32>
    %47 = vector.shape_cast %38 : vector<16x1xf32> to vector<1x16x1xf32>
    %cst_13 = arith.constant dense<0.000000e+00> : vector<1xf32>
    %48 = vector.multi_reduction <add>, %47, %cst_13 [1, 2] : vector<1x16x1xf32> to vector<1xf32>
    %49 = vector.shape_cast %48 : vector<1xf32> to vector<1x1x1xf32>
    %50 = vector.extract %49[0, 0, 0] : f32 from vector<1x1x1xf32>
    %51 = tpu.iota {dimensions = array<i32: 1>} : vector<1x8x128xi32>
    %c0_i32 = arith.constant 0 : i32
    %52 = vector.broadcast %c0_i32 : i32 to vector<1x8x128xi32>
    %53 = arith.cmpi eq, %51, %52 : vector<1x8x128xi32>
    %c1_i32 = arith.constant 1 : i32
    %54 = vector.broadcast %c1_i32 : i32 to vector<1x8x128xi32>
    %55 = arith.cmpi eq, %51, %54 : vector<1x8x128xi32>
    %c2_i32 = arith.constant 2 : i32
    %56 = vector.broadcast %c2_i32 : i32 to vector<1x8x128xi32>
    %57 = arith.cmpi eq, %51, %56 : vector<1x8x128xi32>
    %cst_14 = arith.constant 0.000000e+00 : f32
    %58 = vector.broadcast %50 : f32 to vector<1x8x128xf32>
    %59 = vector.broadcast %cst_14 : f32 to vector<1x8x128xf32>
    %60 = arith.select %57, %58, %59 : vector<1x8x128xi1>, vector<1x8x128xf32>
    %61 = vector.broadcast %46 : f32 to vector<1x8x128xf32>
    %62 = arith.select %55, %61, %60 : vector<1x8x128xi1>, vector<1x8x128xf32>
    %63 = vector.broadcast %42 : f32 to vector<1x8x128xf32>
    %64 = arith.select %53, %63, %62 : vector<1x8x128xi1>, vector<1x8x128xf32>
    %c0_15 = arith.constant 0 : index
    %c0_16 = arith.constant 0 : index
    %c0_17 = arith.constant 0 : index
    %65 = vector.load %arg3[%c0_15, %c0_16, %c0_17] : memref<1x8x128xf32, #tpu.memory_space<vmem>>, vector<1x8x128xf32>
    tpu.vector_store %arg3[%c0_15, %c0_16, %c0_17], %64 {strides = array<i32>} : memref<1x8x128xf32, #tpu.memory_space<vmem>>, vector<1x8x128xf32>,
    return
  }
  func.func @transform_0(%arg0: i32) -> (i32, i32) {
    %c0_i32 = arith.constant 0 : i32
    %c0_i32_0 = arith.constant 0 : i32
    return %arg0, %c0_i32 : i32, i32
  }
  func.func @transform_1(%arg0: i32) -> (i32, i32) {
    %c0_i32 = arith.constant 0 : i32
    %c0_i32_0 = arith.constant 0 : i32
    return %arg0, %c0_i32 : i32, i32
  }
  func.func @transform_2(%arg0: i32) -> (i32, i32, i32) {
    %c0_i32 = arith.constant 0 : i32
    %c0_i32_0 = arith.constant 0 : i32
    %c0_i32_1 = arith.constant 0 : i32
    return %arg0, %c0_i32, %c0_i32_0 : i32, i32, i32
  }
}

</mosaic_0001>

<bundles_post_ra>
// kernel: tpu_custom_call.1
= control target key start
LH: loop header
LB: loop body
LE: loop exit
PB: predicated region body
PF: predicated region fallthrough
CT: control target
= control target key end

     0   :  { %vm25_vm0 = vcmask 261120   ;;  %v198_v4 = vmov 0   ;;  %s266_s0 = inlined_call_operand.vmem [shape: f32[16,32], index: 0, kind: input, shape index: {}]   ;;  %s267_s1 = inlined_call_operand.vmem [shape: s32[16,1], index: 1, kind: input, shape index: {}]   ;;  %s268_s2 = inlined_call_operand.hbm [shape: f32[1,8,128], index: 2, kind: output, shape index: {}]  }
   0x1   :  { %v12_v0 = vld [vmem:[%s266_s0] sm:$0xff]  ;;  %v13_v1 = vld [vmem:[%s266_s0 + $0x8] sm:$0xff]  ;;  %164 = vset.pattern.permute.xlu1 %v198_v4  ;;  %165 = vset.pattern.permute.xlu0 %v198_v4 }
   0x2   :  { %v225_v2 = vld [vmem:[%s267_s1] sm:$0xff]  ;;  %v26_v3 = vsel %vm25_vm0, %v12_v0, -inf }
   0x3   :  { %7 = vsyncpa [#allocation3], 0  ;;  %27 = vmax.xlane.f32.xlu0 %v26_v3  ;;  %65 = vperm.xlu1 %164, %v225_v2   ;;  %v29_v5 = vsel %vm25_vm0, %v13_v1, -inf  ;;  %v15_v6 = vld [vmem:[%s267_s1 + $0x8] sm:$0xff]  ;;  %v17_v11 = vlaneseq  ;;  %v50_v25 = vsel %vm25_vm0, %v12_v0, 0.0  ;;  %v53_v26 = vsel %vm25_vm0, %v13_v1, 0.0 }
   0x4   :  { %vm80_vm3 = vcmp.ne.s32.totalorder %v225_v2, 4294967196  ;;  %v199_v27 = vmov 0.0   ;;  %vm81_vm4 = vcmp.ne.s32.totalorder %v15_v6, 4294967196  ;;  %vm92_vm5 = vcmask 7168   ;;  %s200_s18 = smov [#allocation2]  }
   0x5   :  { %v63_v15 = vand.u32 127, %v17_v11  ;;  %v153_v28 = vsel %vm80_vm3, 1.0, %v199_v27  ;;  %v154_v29 = vsel %vm81_vm4, 1.0, %v199_v27  ;;  %s145_s19 = sshll.u32 %s200_s18, 4  ;;  %s146_s19 = int_to_ptr.vmem [resolvable:$true] %s145_s19 }
   0x6   :  { %v117_v30 = vsel %vm92_vm5, %v153_v28, 0.0  ;;  %v118_v31 = vsel %vm92_vm5, %v154_v29, 0.0  ;;  %s174_s20 = scalar_lea.vmem %s146_s19, 128  ;;  %p179_p1 = scmp.lt.s32.totalorder %s146_s19, %s146_s19 }
   0x7   :  { %30 = vmax.xlane.f32.xlu0 %v29_v5  ;;  %68 = vperm.xlu1 %164, %v15_v6   ;;  %v119_v32 = vadd.f32 %v118_v31, %v117_v30  ;;  %p175_p0 = scmp.ne.s32.totalorder %s146_s19, %s174_s20  ;;  %p180_p2 = scmp.lt.s32.totalorder %s174_s20, %s174_s20 }
   0x9   :  { %p181_p3 = por %p180_p2, %p179_p1 }
   0xb   :  { %p182_p4 = pnand %p181_p3, %p175_p0 }
  0x82   :  { %v66_v14 = vpop.permute.xlu1 %65 }
  0x83   :  { %vm70_vm1 = vcmp.eq.s32.totalorder %v63_v15, %v66_v14 }
  0x84   :  { %v72_v18 = vsel %vm70_vm1, %v12_v0, 0.0 }
  0x85   :  { %v74_v20 = vsel %vm25_vm0, %v72_v18, 0.0 }
  0x86   :  { %v69_v16 = vpop.permute.xlu1 %68 }
  0x87   :  { %vm71_vm2 = vcmp.eq.s32.totalorder %v63_v15, %v69_v16 }
  0x88   :  { %v73_v22 = vsel %vm71_vm2, %v13_v1, 0.0 }
  0x89   :  { %v77_v24 = vsel %vm25_vm0, %v73_v22, 0.0 }
  0x90   :  { %v28_v7 = vpop.xlane.xlu0 %27 }
  0x91   :  { %v32_v8 = vsub.f32 %v12_v0, %v28_v7 }
  0x93   :  { %v34_v9 = vmul.f32 1.442695, %v32_v8 }
  0x94   :  { %v31_v10 = vpop.xlane.xlu0 %30 }
  0x95   :  { %166 = vpow2.f32 %v34_v9  ;;  %v33_v12 = vsub.f32 %v13_v1, %v31_v10 }
  0x97   :  { %v36_v13 = vmul.f32 1.442695, %v33_v12 }
  0x99   :  { %168 = vpow2.f32 %v36_v13 }
  0x9f   :  { %v167_v17 = vpop.eup %166 }
  0xa0   :  { %v38_v19 = vsel %vm25_vm0, %v167_v17, 0.0  ;;  %v18_v17 = vshrl.u32 %v17_v11, 7 }
  0xa1   :  { %39 = vadd.xlane.f32.xlu0 %v38_v19 }
  0xa2   :  { %vm131_vm6 = vcmp.eq.s32.totalorder %v18_v17, 2  ;;  %vm130_vm7 = vcmp.eq.s32.totalorder %v18_v17, 1  ;;  %vm129_vm8 = vcmp.eq.s32.totalorder %v18_v17, 0 }
  0xa3   :  { %v169_v21 = vpop.eup %168 }
  0xa4   :  { %v41_v23 = vsel %vm25_vm0, %v169_v21, 0.0 }
  0xa5   :  { %42 = vadd.xlane.f32.xlu1 %v41_v23  ;;  %75 = vadd.xlane.f32.xlu0 %v74_v20 }
  0xa9   :  { %78 = vadd.xlane.f32.xlu0 %v77_v24 }
  0xad   :  { %51 = vadd.xlane.f32.xlu0 %v50_v25 }
  0xb1   :  { %54 = vadd.xlane.f32.xlu0 %v53_v26 }
 0x12e   :  { %v40_v33 = vpop.xlane.xlu0 %39 }
 0x12f   :  { %170 = vlog2.f32 %v40_v33 }
 0x132   :  { %v43_v34 = vpop.xlane.xlu1 %42  ;;  %v76_v35 = vpop.xlane.xlu0 %75 }
 0x133   :  { %172 = vlog2.f32 %v43_v34 }
 0x136   :  { %v79_v36 = vpop.xlane.xlu0 %78 }
 0x139   :  { %v171_v37 = vpop.eup %170 }
 0x13a   :  { %v45_v38 = vmul.f32 0.6931472, %v171_v37  ;;  %v52_v39 = vpop.xlane.xlu0 %51 }
 0x13c   :  { %v48_v40 = vadd.f32 %v45_v38, %v28_v7 }
 0x13d   :  { %v173_v41 = vpop.eup %172 }
 0x13e   :  { %v47_v42 = vmul.f32 0.6931472, %v173_v41  ;;  %v84_v43 = vsub.f32 %v48_v40, %v76_v35  ;;  %v56_v45 = vmul.f32 32.0, %v48_v40  ;;  %v55_v46 = vpop.xlane.xlu0 %54 }
 0x140   :  { %v49_v44 = vadd.f32 %v47_v42, %v31_v10  ;;  %v86_v47 = vsel %vm80_vm3, %v84_v43, 0.0  ;;  %v58_v52 = vsub.f32 %v56_v45, %v52_v39 }
 0x141   :  { %v105_v53 = vsel %vm92_vm5, %v86_v47, 0.0 }
 0x142   :  { %v85_v48 = vsub.f32 %v49_v44, %v79_v36  ;;  %v57_v49 = vmul.f32 32.0, %v49_v44  ;;  %v93_v57 = vsel %vm92_vm5, %v58_v52, 0.0 }
 0x144   :  { %v87_v50 = vsel %vm81_vm4, %v85_v48, 0.0  ;;  %v59_v51 = vsub.f32 %v57_v49, %v55_v46 }
 0x145   :  { %v106_v54 = vsel %vm92_vm5, %v87_v50, 0.0 }
 0x146   :  { %v107_v55 = vadd.f32 %v106_v54, %v105_v53  ;;  %v94_v56 = vsel %vm92_vm5, %v59_v51, 0.0 }
 0x147   :  { %v95_v58 = vadd.f32 %v94_v56, %v93_v57 }
 0x148   :  { %108 = vadd.xlane.f32.xlu0 %v107_v55 }
 0x14c   :  { %96 = vadd.xlane.f32.xlu0 %v95_v58 }
 0x150   :  { %120 = vadd.xlane.f32.xlu0 %v119_v32 }
 0x1d5   :  { %v109_v59 = vpop.xlane.xlu0 %108 }
 0x1d6   :  { %v110_v60 = vrot.slane %v109_v59, 4 }
 0x1d8   :  { %v111_v61 = vadd.f32 %v110_v60, %v109_v59 }
 0x1d9   :  { %v97_v62 = vpop.xlane.xlu0 %96 }
 0x1da   :  { %v112_v63 = vrot.slane %v111_v61, 2  ;;  %v98_v0 = vrot.slane %v97_v62, 4 }
 0x1dc   :  { %v99_v1 = vadd.f32 %v98_v0, %v97_v62  ;;  %v113_v3 = vadd.f32 %v112_v63, %v111_v61 }
 0x1dd   :  { %v121_v2 = vpop.xlane.xlu0 %120 }
 0x1de   :  { %v100_v4 = vrot.slane %v99_v1, 2  ;;  %v122_v5 = vrot.slane %v121_v2, 4  ;;  %v114_v8 = vrot.slane %v113_v3, 1 }
 0x1e0   :  { %v123_v6 = vadd.f32 %v122_v5, %v121_v2  ;;  %v101_v7 = vadd.f32 %v100_v4, %v99_v1  ;;  %v115_v14 = vadd.f32 %v114_v8, %v113_v3 }
 0x1e2   :  { %v124_v9 = vrot.slane %v123_v6, 2  ;;  %v102_v10 = vrot.slane %v101_v7, 1 }
 0x1e4   :  { %v125_v12 = vadd.f32 %v124_v9, %v123_v6  ;;  %v103_v13 = vadd.f32 %v102_v10, %v101_v7 }
 0x1e6   :  { %155 = vpush %v103_v13  ;;  %v126_v15 = vrot.slane %v125_v12, 1 }
 0x1e7   :  { %157 = vpush %v115_v14 }
 0x1e8   :  { %v127_v16 = vadd.f32 %v126_v15, %v125_v12 }
 0x1ea   :  { %159 = vpush %v127_v16 }
 0x217   :  { %s156_s0 = spop %155 }
 0x218   :  { %s158_s1 = spop %157  ;;  %v136_v21 = vstv %s156_s0 }
 0x219   :  { %v134_v19 = vstv %s158_s1 }
 0x21b   :  { %s160_s17 = spop %159 }
 0x21c   :  { %v132_v18 = vstv %s160_s17 }
 0x21d   :  { %v133_v20 = vsel %vm131_vm6, %v132_v18, 0.0 }
 0x21e   :  { %v135_v22 = vsel %vm130_vm7, %v134_v19, %v133_v20 }
 0x21f   :  { %v137_v23 = vsel %vm129_vm8, %v136_v21, %v135_v22 }
 0x220   :  { %138 = vst [vmem:[#allocation2] sm:$0xff] %v137_v23 }
 0x221   :  { %185 = shalt.err (!%p182_p4)
}
 0x222   :  { %s186_s23 = scalar_lea.hbm %s268_s2, 128 }
 0x223   :  { %p187_p5 = scmp.ne.s32.totalorder %s268_s2, %s186_s23  ;;  %p190_p6 = scmp.lt.u32.totalorder %s186_s23, %s268_s2 }
 0x225   :  { %p192_p7 = pnand %p190_p6, %p187_p5 }
 0x227   :  { %195 = shalt.err (!%p192_p7)
}
 0x228   :  { %148 = dma.vmem_to_hbm [thread:$0]  %s146_s19, 128, %s268_s2, [#allocation3]  }
 0x229   :  { %196 = dma.done.wait [#allocation3], 128  }
 0x22a   :  { %197 = vsyncadd [#allocation3], 4294967168 }
 0x22b   :  { %152 = vsyncpa [#allocation3], 1 }

</bundles_post_ra>
